<compile_context>
chip_gen: v7x
topology: tpu7x:2x2x1
jax: 0.10.0
libtpu: 0.0.40
codegen_flags: <defaults>
</compile_context>

<pallas_src>
import jax
import jax.numpy as jnp
from jax.experimental import pallas as pl
from jax.experimental.pallas import tpu as pltpu


# ------------------------------ Pallas kernel ------------------------------
def _shape_loss_kernel(gt_ref, w_ref, pred_ref, loss_ref):
    """ShapeLoss forward on a lane-dense slab.

    gt_ref  : (2, N*10)  GT shape params, row 0 = right hand, row 1 = left
    w_ref   : (2, N*10)  per-element validity weights (flags repeated over D)
    pred_ref: (S, N*10)  predicted shape params, S heads
    loss_ref: (S, N*10)  elementwise masked L1 (f32)
    """
    gt = gt_ref[...].astype(jnp.float32)       # (2, NT)
    w = w_ref[...].astype(jnp.float32)         # (2, NT)
    pred = pred_ref[...].astype(jnp.float32)   # (S, NT)

    w_r = w[0:1, :]                            # (1, NT) sublane slice (VPU)
    w_l = w[1:2, :]                            # (1, NT)
    w_sum = w_r + w_l                          # (1, NT), values in {0, 1, 2}

    # Exact replacement for `/ (w_sum + 1e-8)` for 0/1 validity flags
    # (1e-8 is below f32 ulp at 1.0 and 2.0; w_sum==0 rows are masked anyway).
    inv = jnp.where(w_sum > 1.5, jnp.float32(0.5), jnp.float32(1.0))
    gt1 = (gt[0:1, :] * w_r + gt[1:2, :] * w_l) * inv          # (1, NT)

    diff = jnp.abs(gt1 - pred)                                 # (S, NT)
    # shape_valid mask fused as a select.
    loss_ref[...] = jnp.where(w_sum > 0.0, diff,
                              jnp.float32(0.0)).astype(loss_ref.dtype)


# ------------------------------- wrapper ------------------------------------
@jax.jit
def shape_loss(shape_gt, shape_pred, mano_valid):
    """JAX/Pallas equivalent of ShapeLoss.forward -> (S, N, 10) f32."""
    S, N, D = shape_pred.shape
    NT = N * D

    # Layout plumbing (tiny, stays fused in XLA):
    #  - right/left GT halves both aligned at lane 0
    #  - validity flags expanded to per-element weights
    #  - predictions / output as a lane-dense (S, N*D) slab
    gt_f32 = shape_gt.astype(jnp.float32)
    gt2 = jnp.stack([gt_f32[:, :D].reshape(NT),
                     gt_f32[:, D:].reshape(NT)], axis=0)             # (2, NT)
    w2 = jnp.repeat(mano_valid.astype(jnp.float32).T, D, axis=1)     # (2, NT)
    pred2 = shape_pred.reshape(S, NT)                                # (S, NT)

    out = pl.pallas_call(
        _shape_loss_kernel,
        out_shape=jax.ShapeDtypeStruct((S, NT), jnp.float32),
        # Gridless: whole arrays resident in VMEM (problem is ~1 KB).
        in_specs=[
            pl.BlockSpec(memory_space=pltpu.MemorySpace.VMEM),  # gt2
            pl.BlockSpec(memory_space=pltpu.MemorySpace.VMEM),  # w2
            pl.BlockSpec(memory_space=pltpu.MemorySpace.VMEM),  # pred2
        ],
        out_specs=pl.BlockSpec(memory_space=pltpu.MemorySpace.VMEM),
    )(gt2, w2, pred2)

    return out.reshape(S, N, D)


# ---------------------------------- main ------------------------------------
if __name__ == "__main__":
    key = jax.random.PRNGKey(0)
    S = 6          # prediction heads / stages
    N = 4          # batch
    D = 10         # shape-param dim per hand

    k1, k2 = jax.random.split(key, 2)
    shape_gt = jax.random.normal(k1, (N, 2 * D), jnp.float32)
    shape_pred = jax.random.normal(k2, (S, N, D), jnp.float32)
    # Exercise all validity patterns: both, right-only, left-only, none.
    mano_valid = jnp.array([[1.0, 1.0],
                            [1.0, 0.0],
                            [0.0, 1.0],
                            [0.0, 0.0]], jnp.float32)

    loss = shape_loss(shape_gt, shape_pred, mano_valid)
    loss = jax.block_until_ready(loss)

    # Pure-JAX reference (mirrors the torch module line-for-line).
    mv_sum = jnp.sum(mano_valid, axis=1, keepdims=True)
    gt1 = (shape_gt[:, :D] * mano_valid[:, :1]
           + shape_gt[:, D:] * mano_valid[:, 1:]) / (mv_sum + 1e-8)
    valid = (mv_sum > 0).astype(jnp.float32)
    ref = jnp.abs(gt1[None] - shape_pred) * valid[None]

    assert loss.shape == (S, N, D), f"bad output shape {loss.shape}"
    assert bool(jnp.all(jnp.isfinite(loss))), "loss has non-finite values"
    assert bool(jnp.allclose(loss, ref, atol=1e-6, rtol=1e-6)), \
        "Pallas kernel does not match reference"
    print("KERNEL_OK")
</pallas_src>

<mosaic_0001>
module attributes {stable_mosaic.version = 11 : i64} {
  func.func @_shape_loss_kernel(%arg0: memref<2x40xf32, #tpu.memory_space<vmem>>, %arg1: memref<2x40xf32, #tpu.memory_space<vmem>>, %arg2: memref<6x40xf32, #tpu.memory_space<vmem>>, %arg3: memref<6x40xf32, #tpu.memory_space<vmem>>) attributes {dimension_semantics = [], scalar_prefetch = 0 : i64, scratch_operands = 0 : i64, tpu.core_type = #tpu.core_type<tc>} {
    %c0 = arith.constant 0 : index
    %c0_0 = arith.constant 0 : index
    %0 = vector.load %arg0[%c0, %c0_0] : memref<2x40xf32, #tpu.memory_space<vmem>>, vector<2x40xf32>
    %c0_1 = arith.constant 0 : index
    %c0_2 = arith.constant 0 : index
    %1 = vector.load %arg1[%c0_1, %c0_2] : memref<2x40xf32, #tpu.memory_space<vmem>>, vector<2x40xf32>
    %c0_3 = arith.constant 0 : index
    %c0_4 = arith.constant 0 : index
    %2 = vector.load %arg2[%c0_3, %c0_4] : memref<6x40xf32, #tpu.memory_space<vmem>>, vector<6x40xf32>
    %3 = vector.extract_strided_slice %1 {offsets = [0, 0], sizes = [1, 40], strides = [1, 1]} : vector<2x40xf32> to vector<1x40xf32>
    %4 = vector.extract_strided_slice %1 {offsets = [1, 0], sizes = [1, 40], strides = [1, 1]} : vector<2x40xf32> to vector<1x40xf32>
    %5 = arith.addf %3, %4 : vector<1x40xf32>
    %cst = arith.constant 1.500000e+00 : f32
    %6 = vector.broadcast %cst : f32 to vector<1x40xf32>
    %7 = arith.cmpf ogt, %5, %6 : vector<1x40xf32>
    %cst_5 = arith.constant 5.000000e-01 : f32
    %cst_6 = arith.constant 1.000000e+00 : f32
    %8 = vector.broadcast %cst_5 : f32 to vector<1x40xf32>
    %9 = vector.broadcast %cst_6 : f32 to vector<1x40xf32>
    %10 = arith.select %7, %8, %9 : vector<1x40xi1>, vector<1x40xf32>
    %11 = vector.extract_strided_slice %0 {offsets = [0, 0], sizes = [1, 40], strides = [1, 1]} : vector<2x40xf32> to vector<1x40xf32>
    %12 = arith.mulf %11, %3 : vector<1x40xf32>
    %13 = vector.extract_strided_slice %0 {offsets = [1, 0], sizes = [1, 40], strides = [1, 1]} : vector<2x40xf32> to vector<1x40xf32>
    %14 = arith.mulf %13, %4 : vector<1x40xf32>
    %15 = arith.addf %12, %14 : vector<1x40xf32>
    %16 = arith.mulf %15, %10 : vector<1x40xf32>
    %17 = vector.broadcast %16 : vector<1x40xf32> to vector<6x40xf32>
    %18 = arith.subf %17, %2 : vector<6x40xf32>
    %19 = math.absf %18 : vector<6x40xf32>
    %cst_7 = arith.constant 0.000000e+00 : f32
    %20 = vector.broadcast %cst_7 : f32 to vector<1x40xf32>
    %21 = arith.cmpf ogt, %5, %20 : vector<1x40xf32>
    %cst_8 = arith.constant 0.000000e+00 : f32
    %22 = vector.shape_cast %21 : vector<1x40xi1> to vector<1x40xi1>
    %23 = vector.broadcast %22 : vector<1x40xi1> to vector<6x40xi1>
    %24 = vector.broadcast %cst_8 : f32 to vector<6x40xf32>
    %25 = arith.select %23, %19, %24 : vector<6x40xi1>, vector<6x40xf32>
    %c0_9 = arith.constant 0 : index
    %c0_10 = arith.constant 0 : index
    %26 = vector.load %arg3[%c0_9, %c0_10] : memref<6x40xf32, #tpu.memory_space<vmem>>, vector<6x40xf32>
    tpu.vector_store %arg3[%c0_9, %c0_10], %25 {strides = array<i32>} : memref<6x40xf32, #tpu.memory_space<vmem>>, vector<6x40xf32>,
    return
  }
}

</mosaic_0001>

<bundles_post_ra>
// kernel: shape_loss.1
= control target key start
LH: loop header
LB: loop body
LE: loop exit
PB: predicated region body
PF: predicated region fallthrough
CT: control target
= control target key end

     0   :  { %v29_v0 = vlaneseq  ;;  %v51_v10 = vmov 1.0   ;;  %v52_v12 = vmov 0   ;;  %vm43_vm3 = vcmask 324608   ;;  %s85_s0 = inlined_call_operand.vmem [shape: f32[2,40], index: 0, kind: input, shape index: {}]   ;;  %s86_s1 = inlined_call_operand.vmem [shape: f32[2,40], index: 1, kind: input, shape index: {}]   ;;  %s87_s2 = inlined_call_operand.vmem [shape: f32[6,40], index: 2, kind: input, shape index: {}]   ;;  %s88_s3 = inlined_call_operand.vmem [shape: f32[6,40], index: 3, kind: output, shape index: {}]  }
   0x1   :  { %v14_v1 = vld [vmem:[%s85_s0] sm:$0x3] }
   0x2   :  { %v15_v2 = vld [vmem:[%s86_s1] sm:$0x3]  ;;  %v30_v5 = vshrl.u32 %v29_v0, 7 }
   0x3   :  { %v18_v3 = vrot.slane %v15_v2, 1  ;;  %v23_v4 = vmul.f32 %v15_v2, %v14_v1  ;;  %v16_v15 = vld [vmem:[%s87_s2] sm:$0x3f] }
   0x4   :  { %v31_v9 = vsub.s32 0, %v30_v5 }
   0x5   :  { %v20_v6 = vadd.f32 %v18_v3, %v15_v2  ;;  %v25_v7 = vrot.slane %v23_v4, 1 }
   0x7   :  { %vm21_vm0 = vcmp.gt.f32.partialorder %v20_v6, 1.5  ;;  %v27_v8 = vadd.f32 %v25_v7, %v23_v4  ;;  %vm35_vm1 = vcmp.gt.f32.partialorder %v20_v6, 0.0 }
   0x8   :  { %v22_v11 = vsel %vm21_vm0, 0.5, %v51_v10  ;;  %v36_v13 = vsel %vm35_vm1, 1, %v52_v12 }
   0x9   :  { %v28_v14 = vmul.f32 %v27_v8, %v22_v11  ;;  %v40_v16 = vrot.slane %v36_v13, %v31_v9 }
   0xb   :  { %v32_v17 = vrot.slane %v28_v14, %v31_v9  ;;  %vm41_vm2 = vcmp.eq.s32.totalorder %v40_v16, 1 }
   0xd   :  { %v33_v18 = vsub.f32 %v32_v17, %v16_v15 }
   0xf   :  { %v34_v19 = vand.u32 2147483647, %v33_v18 }
  0x11   :  { %v42_v20 = vsel %vm41_vm2, %v34_v19, 0.0 }
  0x12   :  { %44 = vst.msk [vmem:[%s88_s3] sm:$0x3f] %vm43_vm3, %v42_v20 }

</bundles_post_ra>
